<compile_context>
chip_gen: v7x
topology: tpu7x:2x2x1
jax: 0.10.0
libtpu: 0.0.40
codegen_flags: <defaults>
</compile_context>

<pallas_src>
import math

import jax
import jax.numpy as jnp
import numpy as np
from jax.experimental import pallas as pl
from jax.experimental.pallas import tpu as pltpu

_LANE = 128
_SUB = 8


def _cdiv(a, b):
    return (a + b - 1) // b


def _round_up(x, m):
    return ((x + m - 1) // m) * m


def _chip_defaults():
    """(num_parallel, max_tile_rows) per TPU generation.

    num_parallel == TensorCores per chip (2 on v7x, 1 on v5e/v6e).
    max_tile_rows sized so a double-buffered f32 block stays inside the
    default scoped-VMEM budget (16 MiB v5e, 32 MiB v6e/v7x) while keeping the
    ~0.35us per-grid-step overhead small relative to the block's DMA time.
    """
    kind = ""
    try:
        kind = jax.devices()[0].device_kind.lower()
    except Exception:
        pass
    if "v7" in kind or "tpu7" in kind:
        return 2, 16384   # 2 TCs; 8 MiB f32 blocks -> 16 MiB dbl-buffered per core
    if "v6" in kind:
        return 1, 16384   # 1 TC; 8 MiB blocks << 32 MiB default scoped VMEM
    if "v5" in kind:
        return 1, 8192    # 1 TC; 4 MiB blocks -> 8 MiB dbl-buffered < 16 MiB default
    return 1, 8192        # conservative fallback


def _make_sumsq_kernel(rows, tile_rows, steps):
    """Build the streaming sum-of-squares kernel for a (rows, 128) slab.

    rows, tile_rows, steps are static Python ints (closed over), so no scalar
    prefetch is needed.  grid = (num_parallel, steps); parallel block p owns
    output rows [p*8, p*8+8) as a resident accumulator across the `s` axis.
    """

    def kernel(z_ref, acc_ref):
        p = pl.program_id(0)
        s = pl.program_id(1)

        @pl.when(s == 0)
        def _init():
            acc_ref[...] = jnp.zeros_like(acc_ref)

        # UNclamped global row of this tile's first row (the index_map may
        # clamp the DMA source, but the mask below uses the true position).
        start = (p * steps + s) * tile_rows

        def _accumulate(zb):
            sq = zb * zb
            # (tile_rows,128) -> (tile_rows//8, 8, 128): pure vreg-tile
            # regrouping; summing axis 0 is plain VPU adds (no per-step
            # cross-lane XLU reduce).
            acc_ref[...] += sq.reshape(-1, _SUB, _LANE).sum(axis=0)

        interior = start + tile_rows <= rows  # tile entirely inside the slab

        @pl.when(interior)
        def _fast():
            _accumulate(z_ref[...].astype(jnp.float32))

        @pl.when(jnp.logical_not(interior))
        def _ragged():
            # Ragged / fully-out-of-range tile: VMEM rows past the array end
            # hold garbage (or clamped re-read data).  Select to 0 BEFORE
            # squaring so NaN/Inf garbage cannot poison the accumulator.
            row_id = jax.lax.broadcasted_iota(jnp.int32, (tile_rows, _LANE), 0)
            valid = row_id < (rows - start)
            _accumulate(jnp.where(valid, z_ref[...].astype(jnp.float32), 0.0))

    return kernel


def realnvp_loss(x, z, sldj, *, k=256, num_parallel=None, max_tile_rows=None):
    """NLL loss for RealNVP. `x` is unused (matches the PyTorch module)."""
    del x  # not used in the forward math
    b = z.shape[0]
    d = int(np.prod(z.shape[1:]))
    n = b * d

    chip_np, chip_tile = _chip_defaults()
    if num_parallel is None:
        num_parallel = chip_np
    if max_tile_rows is None:
        max_tile_rows = chip_tile

    # Sub-32-bit dtypes pack more rows per vreg sublane -> round tiles to that.
    itemsize = int(jnp.dtype(z.dtype).itemsize)
    sub_mult = _SUB * max(1, 4 // itemsize)

    rows_data = _cdiv(n, _LANE)                      # rows holding real data
    tile_rows = min(_round_up(max_tile_rows, sub_mult),
                    _round_up(max(rows_data, 1), sub_mult))
    rows = max(rows_data, tile_rows)                 # slab never smaller than one block
    total_tiles = _cdiv(rows, tile_rows)

    steps = _cdiv(total_tiles, num_parallel)
    if num_parallel > 1 and (num_parallel - 1) * steps >= total_tiles:
        # Not enough tiles to give every parallel block real work.
        num_parallel = 1
        steps = total_tiles

    # Zero-copy reshape when n is already lane-aligned; otherwise only the
    # lane tail (n % 128) / tiny-input row alignment is padded.  Ragged row
    # tiles are masked inside the kernel instead of padded.
    n_pad = rows * _LANE
    z_flat = z.reshape(-1)
    if n_pad > n:
        z_flat = jnp.pad(z_flat, (0, n_pad - n))     # zeros add 0 to sum(z^2)
    z2d = z_flat.reshape(rows, _LANE)

    last_tile = total_tiles - 1

    partials = pl.pallas_call(
        _make_sumsq_kernel(rows, tile_rows, steps),
        out_shape=jax.ShapeDtypeStruct((num_parallel * _SUB, _LANE), jnp.float32),
        grid_spec=pltpu.PrefetchScalarGridSpec(
            num_scalar_prefetch=0,
            grid=(num_parallel, steps),
            in_specs=[
                pl.BlockSpec(
                    (tile_rows, _LANE),
                    # Each parallel block p streams its own contiguous run of
                    # tiles.  Tiles that fall entirely past the slab (possible
                    # only for the last parallel block when total_tiles is not
                    # a multiple of num_parallel) are clamped onto the last
                    # valid tile; the in-kernel mask zeroes their contribution.
                    lambda p, s: (jnp.minimum(p * steps + s, last_tile), 0),
                ),
            ],
            # Per-parallel-block (8, 128) accumulator, resident across `s`.
            out_specs=pl.BlockSpec((_SUB, _LANE), lambda p, s: (p, 0)),
        ),
        compiler_params=pltpu.CompilerParams(
            dimension_semantics=("parallel", "arbitrary"),
        ),
        cost_estimate=pl.CostEstimate(
            flops=2 * n,
            transcendentals=0,
            bytes_accessed=n * itemsize + num_parallel * _SUB * _LANE * 4,
        ),
    )(z2d)

    # Tiny epilogue: one cross-lane reduce + folded constants + mean(sldj).
    ssq = jnp.sum(partials)
    const = (0.5 * math.log(2.0 * math.pi) + math.log(float(k))) * float(d)
    nll = (ssq * jnp.float32(0.5 / b)
           + jnp.float32(const)
           - jnp.mean(sldj.astype(jnp.float32)))
    return nll


def realnvp_loss_ref(x, z, sldj, *, k=256):
    """Pure-JAX reference matching the PyTorch forward exactly."""
    del x
    b = z.shape[0]
    d = int(np.prod(z.shape[1:]))
    prior_ll = -0.5 * (z.astype(jnp.float32) ** 2 + np.log(2.0 * np.pi))
    prior_ll = prior_ll.reshape(b, -1).sum(-1) - np.log(k) * d
    ll = prior_ll + sldj.astype(jnp.float32)
    return -ll.mean()


if __name__ == "__main__":
    key = jax.random.PRNGKey(0)
    kx, kz, ks = jax.random.split(key, 3)

    B, C, H, W = 2, 4, 16, 16
    x = jax.random.normal(kx, (B, C, H, W), dtype=jnp.float32)  # unused by the loss
    z = jax.random.normal(kz, (B, C, H, W), dtype=jnp.float32)
    sldj = jax.random.normal(ks, (B,), dtype=jnp.float32)

    nll = realnvp_loss(x, z, sldj, k=256)
    jax.block_until_ready(nll)

    nll_ref = realnvp_loss_ref(x, z, sldj, k=256)
    np.testing.assert_allclose(np.asarray(nll), np.asarray(nll_ref),
                               rtol=1e-5, atol=1e-4)

    print("KERNEL_OK")
</pallas_src>

<mosaic_0001>
module attributes {stable_mosaic.version = 11 : i64} {
  func.func @kernel(%arg0: i32, %arg1: i32, %arg2: memref<16x128xf32, #tpu.memory_space<vmem>>, %arg3: memref<8x128xf32, #tpu.memory_space<vmem>>) attributes {dimension_semantics = [#tpu.dimension_semantics<parallel>, #tpu.dimension_semantics<arbitrary>], iteration_bounds = array<i64: 1, 1>, scalar_prefetch = 0 : i64, scratch_operands = 0 : i64, tpu.core_type = #tpu.core_type<tc>, window_params = [{transform_indices = @transform_0, window_bounds = array<i64: 16, 128>}, {transform_indices = @transform_1, window_bounds = array<i64: 8, 128>}]} {
    %c0_i32 = arith.constant 0 : i32
    %0 = arith.cmpi eq, %arg1, %c0_i32 : i32
    %1 = arith.extui %0 : i1 to i32
    %c0_i32_0 = arith.constant 0 : i32
    %2 = arith.cmpi ne, %1, %c0_i32_0 : i32
    scf.if %2 {
      %cst = arith.constant 0.000000e+00 : f32
      %13 = vector.broadcast %cst : f32 to vector<8x128xf32>
      %c0 = arith.constant 0 : index
      %c0_5 = arith.constant 0 : index
      %14 = vector.load %arg3[%c0, %c0_5] : memref<8x128xf32, #tpu.memory_space<vmem>>, vector<8x128xf32>
      tpu.vector_store %arg3[%c0, %c0_5], %13 {strides = array<i32>} : memref<8x128xf32, #tpu.memory_space<vmem>>, vector<8x128xf32>,
    } else {
    }
    %c1_i32 = arith.constant 1 : i32
    %3 = arith.muli %arg0, %c1_i32 : i32
    %4 = arith.addi %3, %arg1 : i32
    %c16_i32 = arith.constant 16 : i32
    %5 = arith.muli %4, %c16_i32 : i32
    %c16_i32_1 = arith.constant 16 : i32
    %6 = arith.addi %5, %c16_i32_1 : i32
    %c16_i32_2 = arith.constant 16 : i32
    %7 = arith.cmpi sle, %6, %c16_i32_2 : i32
    %8 = arith.extui %7 : i1 to i32
    %c0_i32_3 = arith.constant 0 : i32
    %9 = arith.cmpi ne, %8, %c0_i32_3 : i32
    scf.if %9 {
      %c0 = arith.constant 0 : index
      %c0_5 = arith.constant 0 : index
      %13 = vector.load %arg2[%c0, %c0_5] : memref<16x128xf32, #tpu.memory_space<vmem>>, vector<16x128xf32>
      %14 = arith.mulf %13, %13 : vector<16x128xf32>
      %c0_6 = arith.constant 0 : index
      %c0_7 = arith.constant 0 : index
      %15 = vector.load %arg3[%c0_6, %c0_7] : memref<8x128xf32, #tpu.memory_space<vmem>>, vector<8x128xf32>
      %16 = vector.shape_cast %14 : vector<16x128xf32> to vector<2x8x128xf32>
      %cst = arith.constant dense<0.000000e+00> : vector<8x128xf32>
      %17 = vector.multi_reduction <add>, %16, %cst [0] : vector<2x8x128xf32> to vector<8x128xf32>
      %18 = arith.addf %15, %17 : vector<8x128xf32>
      %c0_8 = arith.constant 0 : index
      %c0_9 = arith.constant 0 : index
      %19 = vector.load %arg3[%c0_8, %c0_9] : memref<8x128xf32, #tpu.memory_space<vmem>>, vector<8x128xf32>
      tpu.vector_store %arg3[%c0_8, %c0_9], %18 {strides = array<i32>} : memref<8x128xf32, #tpu.memory_space<vmem>>, vector<8x128xf32>,
    } else {
    }
    %true = arith.constant true
    %10 = arith.xori %7, %true : i1
    %11 = arith.extui %10 : i1 to i32
    %c0_i32_4 = arith.constant 0 : i32
    %12 = arith.cmpi ne, %11, %c0_i32_4 : i32
    scf.if %12 {
      %13 = tpu.iota {dimensions = array<i32: 0>} : vector<16x128xi32>
      %c16_i32_5 = arith.constant 16 : i32
      %14 = arith.subi %c16_i32_5, %5 : i32
      %15 = vector.broadcast %14 : i32 to vector<16x128xi32>
      %16 = arith.cmpi slt, %13, %15 : vector<16x128xi32>
      %c0 = arith.constant 0 : index
      %c0_6 = arith.constant 0 : index
      %17 = vector.load %arg2[%c0, %c0_6] : memref<16x128xf32, #tpu.memory_space<vmem>>, vector<16x128xf32>
      %cst = arith.constant 0.000000e+00 : f32
      %18 = vector.broadcast %cst : f32 to vector<16x128xf32>
      %19 = arith.select %16, %17, %18 : vector<16x128xi1>, vector<16x128xf32>
      %20 = arith.mulf %19, %19 : vector<16x128xf32>
      %c0_7 = arith.constant 0 : index
      %c0_8 = arith.constant 0 : index
      %21 = vector.load %arg3[%c0_7, %c0_8] : memref<8x128xf32, #tpu.memory_space<vmem>>, vector<8x128xf32>
      %22 = vector.shape_cast %20 : vector<16x128xf32> to vector<2x8x128xf32>
      %cst_9 = arith.constant dense<0.000000e+00> : vector<8x128xf32>
      %23 = vector.multi_reduction <add>, %22, %cst_9 [0] : vector<2x8x128xf32> to vector<8x128xf32>
      %24 = arith.addf %21, %23 : vector<8x128xf32>
      %c0_10 = arith.constant 0 : index
      %c0_11 = arith.constant 0 : index
      %25 = vector.load %arg3[%c0_10, %c0_11] : memref<8x128xf32, #tpu.memory_space<vmem>>, vector<8x128xf32>
      tpu.vector_store %arg3[%c0_10, %c0_11], %24 {strides = array<i32>} : memref<8x128xf32, #tpu.memory_space<vmem>>, vector<8x128xf32>,
    } else {
    }
    return
  }
  func.func @transform_0(%arg0: i32, %arg1: i32) -> (i32, i32) {
    %c1_i32 = arith.constant 1 : i32
    %0 = arith.muli %arg0, %c1_i32 : i32
    %1 = arith.addi %0, %arg1 : i32
    %c0_i32 = arith.constant 0 : i32
    %2 = arith.minsi %1, %c0_i32 : i32
    %c0_i32_0 = arith.constant 0 : i32
    %c0_i32_1 = arith.constant 0 : i32
    return %2, %c0_i32_0 : i32, i32
  }
  func.func @transform_1(%arg0: i32, %arg1: i32) -> (i32, i32) {
    %c0_i32 = arith.constant 0 : i32
    %c0_i32_0 = arith.constant 0 : i32
    return %arg0, %c0_i32 : i32, i32
  }
}

</mosaic_0001>

<bundles_post_ra>
// kernel: tpu_custom_call.1
= control target key start
LH: loop header
LB: loop body
LE: loop exit
PB: predicated region body
PF: predicated region fallthrough
CT: control target
= control target key end

     0   :  { %6 = vsyncpa [#allocation3], 0  ;;  %s182_s0 = inlined_call_operand.hbm [shape: f32[16,128], index: 0, kind: input, shape index: {}]   ;;  %s183_s1 = inlined_call_operand.hbm [shape: f32[8,128], index: 1, kind: output, shape index: {}]  }
   0x1   :  { %7 = vsyncpa [#allocation4], 0  ;;  %s144_s6 = smov [#allocation2]   ;;  %s96_s10 = scalar_lea.hbm %s182_s0, 256 }
   0x2   :  { %s19_s7 = sshll.u32 %s144_s6, 4  ;;  %p97_p0 = scmp.ne.s32.totalorder %s182_s0, %s96_s10  ;;  %s20_s7 = int_to_ptr.vmem [resolvable:$true] %s19_s7 }
   0x3   :  { %p100_p1 = scmp.lt.u32.totalorder %s96_s10, %s182_s0 }
   0x5   :  { %p102_p2 = pnand %p100_p1, %p97_p0 }
   0x7   :  { %105 = shalt.err (!%p102_p2)
}
   0x8   :  { %s106_s15 = scalar_lea.vmem %s20_s7, 256  ;;  %p111_p4 = scmp.lt.s32.totalorder %s20_s7, %s20_s7 }
   0x9   :  { %p107_p3 = scmp.ne.s32.totalorder %s20_s7, %s106_s15  ;;  %p112_p5 = scmp.lt.s32.totalorder %s106_s15, %s106_s15 }
   0xb   :  { %p113_p6 = por %p112_p5, %p111_p4 }
   0xd   :  { %p114_p7 = pnand %p113_p6, %p107_p3 }
   0xf   :  { %117 = shalt.err (!%p114_p7)
}
  0x10   :  { %s145_s16 = smov 128   ;;  %s146_s17 = smov 8  }
  0x11   :  { %25 = dma.hbm_to_vmem [thread:$0]  %s182_s0, 256, %s20_s7, [#allocation3], %s145_s16, %s145_s16, %s146_s17  }
  0x12   :  { %140 = dma.done.wait [#allocation3], 256  }
  0x13   :  { %141 = vsyncadd [#allocation3], 4294967040  ;;  %v45_v0 = vld [vmem:[#allocation2] sm:$0xff]  ;;  %v46_v1 = vld [vmem:[#allocation2 + $0x8] sm:$0xff]  ;;  %s147_s20 = smov [#allocation5]  }
  0x14   :  { %v47_v2 = vmul.f32 %v45_v0, %v45_v0  ;;  %v48_v3 = vmul.f32 %v46_v1, %v46_v1  ;;  %s80_s21 = sshll.u32 %s147_s20, 4  ;;  %s81_s21 = int_to_ptr.vmem [resolvable:$true] %s80_s21 }
  0x15   :  { %s118_s22 = scalar_lea.vmem %s81_s21, 128  ;;  %p123_p9 = scmp.lt.s32.totalorder %s81_s21, %s81_s21 }
  0x16   :  { %v50_v4 = vadd.f32 %v48_v3, %v47_v2  ;;  %p119_p8 = scmp.ne.s32.totalorder %s81_s21, %s118_s22  ;;  %p124_p10 = scmp.lt.s32.totalorder %s118_s22, %s118_s22 }
  0x18   :  { %52 = vst [vmem:[#allocation5] sm:$0xff] %v50_v4  ;;  %p125_p11 = por %p124_p10, %p123_p9 }
  0x1a   :  { %p126_p12 = pnand %p125_p11, %p119_p8 }
  0x1c   :  { %129 = shalt.err (!%p126_p12)
}
  0x1d   :  { %s130_s24 = scalar_lea.hbm %s183_s1, 128 }
  0x1e   :  { %p131_p13 = scmp.ne.s32.totalorder %s183_s1, %s130_s24  ;;  %p134_p0 = scmp.lt.u32.totalorder %s130_s24, %s183_s1 }
  0x20   :  { %p136_p1 = pnand %p134_p0, %p131_p13 }
  0x22   :  { %139 = shalt.err (!%p136_p1)
}
  0x23   :  { %83 = dma.vmem_to_hbm [thread:$0]  %s81_s21, 128, %s183_s1, [#allocation4]  }
  0x24   :  { %142 = dma.done.wait [#allocation4], 128  }
  0x25   :  { %143 = vsyncadd [#allocation4], 4294967168 }
  0x26   :  { %87 = vsyncpa [#allocation3], 1 }
  0x27   :  { %88 = vsyncpa [#allocation4], 1 }

</bundles_post_ra>
